<compile_context>
chip_gen: v5e
topology: v5e:2x2
jax: 0.10.0
libtpu: 0.0.40
codegen_flags: <defaults>
</compile_context>

<pallas_src>
import functools
import numpy as np
import jax
import jax.numpy as jnp
from jax.experimental import pallas as pl
from jax.experimental.pallas import tpu as pltpu

VMEM = pltpu.MemorySpace.VMEM
SMEM = pltpu.MemorySpace.SMEM
F32 = jnp.float32
BF16 = jnp.bfloat16


def _default_vmem_limit():
    # ~half of physical VMEM: ~64 MiB on v5e/v6e (128 MiB chips), 32 MiB on v7x (64 MiB).
    try:
        cap = int(pltpu.get_tpu_info().vmem_capacity_bytes)
        return int(min(96 * 1024 * 1024, max(32 * 1024 * 1024, cap // 2)))
    except Exception:
        return 32 * 1024 * 1024


_VMEM_LIMIT = _default_vmem_limit()


# ----------------------------- in-kernel helpers -----------------------------

def _mxu(a, b):
    """bf16 MXU operands, f32 accumulation."""
    return jnp.dot(a.astype(BF16), b.astype(BF16), preferred_element_type=F32)


def _ln(x, g, b, eps=1e-5):
    """LayerNorm over the last dim, all statistics in f32."""
    mu = jnp.mean(x, axis=-1, keepdims=True)
    var = jnp.mean((x - mu) ** 2, axis=-1, keepdims=True)
    return (x - mu) * jax.lax.rsqrt(var + eps) * g + b


def _rep_spec(shape):
    """Whole-array block replicated across the grid (fetched once)."""
    nd = len(shape)
    return pl.BlockSpec(tuple(shape), lambda *g, _nd=nd: (0,) * _nd)


def _layer_spec(arr):
    """Per-layer block of a (depth, ...) stacked parameter; indexed by the inner grid axis."""
    rest = tuple(arr.shape[1:])
    nz = len(rest)
    return pl.BlockSpec((1,) + rest, lambda b, l, _nz=nz: (l,) + (0,) * _nz)


# --------------------------- tiled linear (matmul) ---------------------------

def _linear_tiled_kernel(x_ref, w_ref, b_ref, o_ref, acc_ref):
    @pl.when(pl.program_id(2) == 0)
    def _():
        acc_ref[...] = jnp.zeros_like(acc_ref)

    acc_ref[...] += jnp.dot(x_ref[...], w_ref[...], preferred_element_type=F32)

    @pl.when(pl.program_id(2) == pl.num_programs(2) - 1)
    def _():
        o_ref[...] = (acc_ref[...] + b_ref[...]).astype(o_ref.dtype)


def _pick_tile(dim, pref, align):
    """Largest tile <= pref that divides dim and is a multiple of align, else full dim."""
    t = min(pref, dim)
    t -= t % align
    while t >= align:
        if dim % t == 0:
            return t
        t -= align
    return dim


def linear2d(x, w, b, out_dtype=F32):
    M, K = x.shape
    N = w.shape[1]
    big = _VMEM_LIMIT >= 64 * 1024 * 1024        # v5e/v6e: bigger tiles; v7x: smaller
    tm = _pick_tile(M, 512 if big else 256, 8)
    tn = _pick_tile(N, 512 if big else 256, 128)
    tk = _pick_tile(K, 512, 128)
    grid = (M // tm, N // tn, K // tk)
    return pl.pallas_call(
        _linear_tiled_kernel,
        out_shape=jax.ShapeDtypeStruct((M, N), out_dtype),
        grid=grid,
        in_specs=[
            pl.BlockSpec((tm, tk), lambda i, j, k: (i, k)),
            pl.BlockSpec((tk, tn), lambda i, j, k: (k, j)),
            pl.BlockSpec((1, tn), lambda i, j, k: (0, j)),
        ],
        out_specs=pl.BlockSpec((tm, tn), lambda i, j, k: (i, j)),
        scratch_shapes=[pltpu.VMEM((tm, tn), F32)],
        compiler_params=pltpu.CompilerParams(
            dimension_semantics=("parallel", "parallel", "arbitrary"),
            vmem_limit_bytes=_VMEM_LIMIT),
        cost_estimate=pl.CostEstimate(
            flops=2 * M * N * K, transcendentals=0,
            bytes_accessed=2 * (M * K + K * N) + 4 * (M * N + N)),
    )(x.astype(BF16), w.astype(BF16), b.reshape(1, N).astype(F32))


# ---------------------- fused transformer stack kernel -----------------------

_STACK_KEYS = ('n1g', 'n1b', 'wq', 'wk', 'wv', 'bq', 'bk', 'bv', 'wp', 'bproj',
               'n2g', 'n2b', 'w1', 'b1', 'w2', 'b2')
_STACK_BF16 = ('wq', 'wk', 'wv', 'wp', 'w1', 'w2')


def stack_blocks(blocks, num_heads):
    """Stack per-block params along a leading layer axis, pre-split per head,
    pre-fold 1/sqrt(Dh) into (wq, bq); weights bf16, LN params / biases f32."""
    D = blocks[0]['qkv_w'].shape[0]
    Dh = D // num_heads
    scale = Dh ** -0.5

    def per(bp):
        qkv_w, qkv_b = bp['qkv_w'], bp['qkv_b']
        hw = lambda w: w.reshape(D, num_heads, Dh).transpose(1, 0, 2)     # (H, D, Dh)
        return dict(
            n1g=bp['n1_g'].reshape(1, D), n1b=bp['n1_b'].reshape(1, D),
            wq=hw(qkv_w[:, :D]) * scale,
            wk=hw(qkv_w[:, D:2 * D]),
            wv=hw(qkv_w[:, 2 * D:]),
            bq=qkv_b[:D].reshape(num_heads, 1, Dh) * scale,
            bk=qkv_b[D:2 * D].reshape(num_heads, 1, Dh),
            bv=qkv_b[2 * D:].reshape(num_heads, 1, Dh),
            wp=bp['proj_w'].reshape(num_heads, Dh, D),
            bproj=bp['proj_b'].reshape(1, D),
            n2g=bp['n2_g'].reshape(1, D), n2b=bp['n2_b'].reshape(1, D),
            w1=bp['fc1_w'], b1=bp['fc1_b'].reshape(1, -1),
            w2=bp['fc2_w'], b2=bp['fc2_b'].reshape(1, D))

    per_layer = [per(bp) for bp in blocks]
    out = {}
    for k in _STACK_KEYS:
        v = jnp.stack([d[k] for d in per_layer], axis=0)
        out[k] = v.astype(BF16 if k in _STACK_BF16 else F32)
    return out


def _vit_stack_kernel(x_ref, n1g, n1b, wq, wk, wv, bq, bk, bv, wp, bproj,
                      n2g, n2b, w1, b1, w2, b2, o_ref, res_ref,
                      *, num_heads, s_valid):
    layer = pl.program_id(1)

    @pl.when(layer == 0)
    def _():
        res_ref[...] = x_ref[0].astype(F32)

    x = res_ref[...]                                   # (S, D) f32 residual stream
    S, D = x.shape

    # --- attention: LN1 -> head-batched QKV -> softmax(qk^T) v -> proj -> residual
    h = _ln(x, n1g[0], n1b[0])
    hb = jnp.broadcast_to(h.astype(BF16)[None], (num_heads, S, D))
    # 1/sqrt(Dh) pre-folded into wq/bq in the wrapper (free).
    q = jnp.einsum('hsd,hde->hse', hb, wq[0], preferred_element_type=F32) + bq[0]
    k = jnp.einsum('hsd,hde->hse', hb, wk[0], preferred_element_type=F32) + bk[0]
    v = jnp.einsum('hsd,hde->hse', hb, wv[0], preferred_element_type=F32) + bv[0]
    s = jnp.einsum('hqe,hke->hqk', q.astype(BF16), k.astype(BF16),
                   preferred_element_type=F32)          # (H, S, S) f32
    if s_valid < S:
        col = jax.lax.broadcasted_iota(jnp.int32, (1, 1, S), 2)
        s = jnp.where(col < s_valid, s, -1e30)          # mask padded key tokens
    s = s - jnp.max(s, axis=-1, keepdims=True)
    p = jnp.exp(s)
    denom = jnp.sum(p, axis=-1, keepdims=True)          # (H, S, 1)
    o = jnp.einsum('hqk,hke->hqe', p.astype(BF16), v.astype(BF16),
                   preferred_element_type=F32)          # (H, S, Dh) unnormalized
    o = o * pl.reciprocal(denom, approx=False)          # normalize after PV: O(S*Dh)
    proj = jnp.einsum('hse,heo->hso', o.astype(BF16), wp[0],
                      preferred_element_type=F32)       # (H, S, D)
    attn = proj[0]
    for hh in range(1, num_heads):
        attn = attn + proj[hh]
    x = x + attn + bproj[0]

    # --- MLP: LN2 -> fc1 -> GELU -> fc2 -> residual (elementwise math in f32)
    # TODO(synk): on v7x with D>=768, tile fc1/fc2 over the hidden dim (emit_pipeline)
    # to keep the fused-block weights within 64 MiB VMEM.
    h = _ln(x, n2g[0], n2b[0])
    h = _mxu(h, w1[0]) + b1[0]
    # TODO(synk): exact erf GELU if Mosaic erf lowering is available; tanh approx used.
    h = jax.nn.gelu(h, approximate=True)
    h = _mxu(h, w2[0]) + b2[0]
    res_ref[...] = x + h

    @pl.when(layer == pl.num_programs(1) - 1)
    def _():
        o_ref[0] = res_ref[...].astype(o_ref.dtype)


def vit_stack(x, stacked, num_heads):
    """All blocks of a transformer stack in a single fused pallas_call."""
    B, S, D = x.shape
    s_pad = ((S + 7) // 8) * 8                          # sublane-aligned token count
    if s_pad != S:
        x = jnp.pad(x, ((0, 0), (0, s_pad - S), (0, 0)))
    L = stacked['wq'].shape[0]
    hidden = stacked['w1'].shape[-1]
    params = [stacked[k] for k in _STACK_KEYS]

    tok_spec = pl.BlockSpec((1, s_pad, D), lambda b, l: (b, 0, 0))
    in_specs = [tok_spec] + [_layer_spec(a) for a in params]

    flops_layer = 2 * s_pad * D * (4 * D + 2 * hidden) + 4 * s_pad * s_pad * D
    w_bytes = 2 * (4 * D * D + 2 * D * hidden)
    out = pl.pallas_call(
        functools.partial(_vit_stack_kernel, num_heads=num_heads, s_valid=S),
        out_shape=jax.ShapeDtypeStruct((B, s_pad, D), BF16),
        grid=(B, L),
        in_specs=in_specs,
        out_specs=tok_spec,
        scratch_shapes=[pltpu.VMEM((s_pad, D), F32)],
        compiler_params=pltpu.CompilerParams(
            dimension_semantics=("parallel", "arbitrary"),
            vmem_limit_bytes=_VMEM_LIMIT),
        cost_estimate=pl.CostEstimate(
            flops=int(B * L * flops_layer),
            transcendentals=int(B * L * s_pad * (num_heads * s_pad + hidden)),
            bytes_accessed=int(B * L * w_bytes + 2 * 2 * B * s_pad * D)),
    )(x.astype(BF16), *params)
    return out[:, :S, :]


# -------- final encoder LN computed once, fused with both of its consumers ----

def _enc_head_kernel(x_ref, g_ref, b_ref, wdec_ref, bdec_ref, wimg_ref, bimg_ref,
                     dec_ref, img_ref):
    x = x_ref[0].astype(F32)                            # (S, D)
    h = _ln(x, g_ref[...], b_ref[...])
    dec_ref[0] = (_mxu(h, wdec_ref[...]) + bdec_ref[...]).astype(dec_ref.dtype)
    # mean over patch tokens commutes with the linear: mean(LN(x)[1:]) @ W + b
    pooled = jnp.mean(h[1:, :], axis=0, keepdims=True)  # (1, D)
    img_ref[0] = (_mxu(pooled, wimg_ref[...]) + bimg_ref[...]).astype(img_ref.dtype)


def encoder_head(latent, g, b, wdec, bdec, wimg, bimg):
    B, S, D = latent.shape
    Dd, Di = wdec.shape[1], wimg.shape[1]
    dec, img = pl.pallas_call(
        _enc_head_kernel,
        out_shape=(jax.ShapeDtypeStruct((B, S, Dd), F32),
                   jax.ShapeDtypeStruct((B, 1, Di), F32)),
        grid=(B,),
        in_specs=[pl.BlockSpec((1, S, D), lambda i: (i, 0, 0)),
                  _rep_spec((1, D)), _rep_spec((1, D)),
                  _rep_spec((D, Dd)), _rep_spec((1, Dd)),
                  _rep_spec((D, Di)), _rep_spec((1, Di))],
        out_specs=(pl.BlockSpec((1, S, Dd), lambda i: (i, 0, 0)),
                   pl.BlockSpec((1, 1, Di), lambda i: (i, 0, 0))),
        compiler_params=pltpu.CompilerParams(
            dimension_semantics=("parallel",),
            vmem_limit_bytes=_VMEM_LIMIT),
    )(latent.astype(BF16), g.reshape(1, D).astype(F32), b.reshape(1, D).astype(F32),
      wdec.astype(BF16), bdec.reshape(1, Dd).astype(F32),
      wimg.astype(BF16), bimg.reshape(1, Di).astype(F32))
    return dec, img[:, 0, :]


# -------------------------- fused LayerNorm + linear --------------------------

def _ln_linear_kernel(x_ref, g_ref, b_ref, w_ref, bias_ref, o_ref, *, eps):
    h = _ln(x_ref[0].astype(F32), g_ref[...], b_ref[...], eps)
    o_ref[0] = (_mxu(h, w_ref[...]) + bias_ref[...]).astype(o_ref.dtype)


def ln_linear(x, g, b, w, bias, eps=1e-5, out_dtype=F32):
    """Fused LayerNorm + matmul, M-tiled over the batch axis of a 3-D input."""
    B, S, K = x.shape
    N = w.shape[1]
    return pl.pallas_call(
        functools.partial(_ln_linear_kernel, eps=eps),
        out_shape=jax.ShapeDtypeStruct((B, S, N), out_dtype),
        grid=(B,),
        in_specs=[pl.BlockSpec((1, S, K), lambda i: (i, 0, 0)),
                  _rep_spec((1, K)), _rep_spec((1, K)),
                  _rep_spec((K, N)), _rep_spec((1, N))],
        out_specs=pl.BlockSpec((1, S, N), lambda i: (i, 0, 0)),
        compiler_params=pltpu.CompilerParams(
            dimension_semantics=("parallel",),
            vmem_limit_bytes=_VMEM_LIMIT),
        cost_estimate=pl.CostEstimate(
            flops=2 * B * S * N * K + 8 * B * S * K, transcendentals=B * S,
            bytes_accessed=2 * (B * S * K + K * N) + 4 * (B * S * N + 2 * K + N)),
    )(x.astype(BF16), g.reshape(1, K).astype(F32), b.reshape(1, K).astype(F32),
      w.astype(BF16), bias.reshape(1, N).astype(F32))


# --------------------------- masked MSE (MAE) loss ----------------------------

def _mae_loss_kernel(pred_ref, tgt_ref, mask_ref, o_ref, *, norm_pix):
    i = pl.program_id(0)

    @pl.when(i == 0)
    def _():
        o_ref[0, 0] = jnp.float32(0.0)
        o_ref[0, 1] = jnp.float32(0.0)

    pred = pred_ref[...]                                # (1, L, P) f32
    t = tgt_ref[...]
    if norm_pix:
        P = t.shape[-1]
        mu = jnp.mean(t, axis=-1, keepdims=True)
        # torch.var(dim=-1) is unbiased -> divide by (P - 1)
        var = jnp.sum((t - mu) ** 2, axis=-1, keepdims=True) / (P - 1)
        t = (t - mu) * jax.lax.rsqrt(var + 1e-6)
    l = jnp.mean((pred - t) ** 2, axis=-1)              # (1, L)
    m = mask_ref[0]                                     # (1, L)
    o_ref[0, 0] = o_ref[0, 0] + jnp.sum(l * m)
    o_ref[0, 1] = o_ref[0, 1] + jnp.sum(m)


def masked_mse_loss(pred, target, mask, norm_pix=True):
    B, L, P = pred.shape
    out = pl.pallas_call(
        functools.partial(_mae_loss_kernel, norm_pix=norm_pix),
        out_shape=jax.ShapeDtypeStruct((1, 2), F32),
        grid=(B,),
        in_specs=[pl.BlockSpec((1, L, P), lambda i: (i, 0, 0)),
                  pl.BlockSpec((1, L, P), lambda i: (i, 0, 0)),
                  pl.BlockSpec((1, 1, L), lambda i: (i, 0, 0))],
        out_specs=pl.BlockSpec((1, 2), lambda i: (0, 0), memory_space=SMEM),
        compiler_params=pltpu.CompilerParams(dimension_semantics=("arbitrary",)),
    )(pred.astype(F32), target.astype(F32), mask.reshape(B, 1, L).astype(F32))
    return out[0, 0] / jnp.maximum(out[0, 1], 1e-6)


# ------------------------------ CLIP-style logits ------------------------------

def create_logits(x1, x2, tpar):
    # 2x2 logits matrix: a pallas_call here is pure launch overhead -> plain jnp/f32.
    x1 = x1 / jnp.linalg.norm(x1, axis=-1, keepdims=True)
    x2 = x2 / jnp.linalg.norm(x2, axis=-1, keepdims=True)
    logits1 = tpar * (x1 @ x2.T)
    return logits1, logits1.T                           # logits2 = t * x2 @ x1.T


# ----------------------------- configuration --------------------------------

class Config:
    img_size = 32
    patch_size = 8
    in_chans = 3
    embed_dim = 128
    depth = 2
    num_heads = 4
    decoder_embed_dim = 64
    decoder_depth = 1
    decoder_num_heads = 4
    mlp_ratio = 4.0
    SR = 0.0              # SR==0 branch (no resize). TODO(synk): SR==1.0 needs bicubic resize.
    norm_pix_loss = True
    T = 0.07
    bert_dim = 768        # hard-coded 768 in the reference (img_mlp -> 768)
    vocab = 32
    text_len = 8


# ------------------------ deterministic parameter init ----------------------

def get_2d_sincos_pos_embed(embed_dim, grid_size, cls_token=False):
    def emb_1d(dim, pos):
        omega = np.arange(dim // 2, dtype=np.float64)
        omega /= dim / 2.0
        omega = 1.0 / 10000 ** omega
        out = np.einsum('m,d->md', pos.reshape(-1), omega)
        return np.concatenate([np.sin(out), np.cos(out)], axis=1)

    grid_h = np.arange(grid_size, dtype=np.float64)
    grid_w = np.arange(grid_size, dtype=np.float64)
    grid = np.meshgrid(grid_w, grid_h)
    grid = np.stack(grid, axis=0).reshape(2, -1)
    emb = np.concatenate([emb_1d(embed_dim // 2, grid[0]),
                          emb_1d(embed_dim // 2, grid[1])], axis=1)
    if cls_token:
        emb = np.concatenate([np.zeros((1, embed_dim)), emb], axis=0)
    return emb.astype(np.float32)


def xavier_uniform(key, shape):
    bound = float(np.sqrt(6.0 / (shape[0] + shape[1])))
    return jax.random.uniform(key, shape, F32, -bound, bound)


def make_block_params(key, dim, mlp_ratio):
    ks = jax.random.split(key, 4)
    hidden = int(dim * mlp_ratio)
    return dict(
        n1_g=jnp.ones((dim,)), n1_b=jnp.zeros((dim,)),
        qkv_w=xavier_uniform(ks[0], (dim, 3 * dim)), qkv_b=jnp.zeros((3 * dim,)),
        proj_w=xavier_uniform(ks[1], (dim, dim)), proj_b=jnp.zeros((dim,)),
        n2_g=jnp.ones((dim,)), n2_b=jnp.zeros((dim,)),
        fc1_w=xavier_uniform(ks[2], (dim, hidden)), fc1_b=jnp.zeros((hidden,)),
        fc2_w=xavier_uniform(ks[3], (hidden, dim)), fc2_b=jnp.zeros((dim,)),
    )


def init_params(cfg, key):
    ks = iter(jax.random.split(key, 64))
    num_patches = (cfg.img_size // cfg.patch_size) ** 2
    gs = int(num_patches ** 0.5)
    p = {}
    p['patch_w'] = xavier_uniform(next(ks), (cfg.in_chans * cfg.patch_size ** 2, cfg.embed_dim))
    p['patch_b'] = jnp.zeros((cfg.embed_dim,))
    p['cls_token'] = 0.02 * jax.random.normal(next(ks), (1, 1, cfg.embed_dim))
    p['pos_embed'] = jnp.asarray(get_2d_sincos_pos_embed(cfg.embed_dim, gs, True))[None]
    p['blocks'] = [make_block_params(next(ks), cfg.embed_dim, cfg.mlp_ratio)
                   for _ in range(cfg.depth)]
    p['norm_g'] = jnp.ones((cfg.embed_dim,)); p['norm_b'] = jnp.zeros((cfg.embed_dim,))
    p['dec_embed_w'] = xavier_uniform(next(ks), (cfg.embed_dim, cfg.decoder_embed_dim))
    p['dec_embed_b'] = jnp.zeros((cfg.decoder_embed_dim,))
    p['mask_token'] = 0.02 * jax.random.normal(next(ks), (1, 1, cfg.decoder_embed_dim))
    p['dec_pos_embed'] = jnp.asarray(get_2d_sincos_pos_embed(cfg.decoder_embed_dim, gs, True))[None]
    p['dec_blocks'] = [make_block_params(next(ks), cfg.decoder_embed_dim, cfg.mlp_ratio)
                       for _ in range(cfg.decoder_depth)]
    p['dec_norm_g'] = jnp.ones((cfg.decoder_embed_dim,))
    p['dec_norm_b'] = jnp.zeros((cfg.decoder_embed_dim,))
    pred_dim = cfg.patch_size ** 2 * cfg.in_chans            # SR == 0.0 branch
    p['dec_pred_w'] = xavier_uniform(next(ks), (cfg.decoder_embed_dim, pred_dim))
    p['dec_pred_b'] = jnp.zeros((pred_dim,))
    p['img_mlp_w'] = xavier_uniform(next(ks), (cfg.embed_dim, cfg.bert_dim))
    p['img_mlp_b'] = jnp.zeros((cfg.bert_dim,))
    p['pw_img_w'] = jnp.zeros((num_patches, 1))              # init_pos_weight() zeroes the weight
    p['pw_img_b'] = jnp.zeros((1,))
    p['Tpar'] = jnp.asarray(1.0 / cfg.T, F32)
    # TODO(synk): real BertEncoder (HuggingFace) is external; deterministic surrogate params:
    p['tok_emb'] = 0.02 * jax.random.normal(next(ks), (cfg.vocab, cfg.bert_dim))
    p['bert_w'] = xavier_uniform(next(ks), (cfg.bert_dim, cfg.bert_dim))
    p['bert_b'] = jnp.zeros((cfg.bert_dim,))
    # Pre-stacked / head-split / bf16 weights for the fused transformer stacks.
    p['enc_stack'] = stack_blocks(p['blocks'], cfg.num_heads)
    p['dec_stack'] = stack_blocks(p['dec_blocks'], cfg.decoder_num_heads)
    return p


# ----------------------------- model (forward) ------------------------------

def patch_embed(imgs, w, b, p):
    # Conv2d(stride=p, kernel=p) == im2col with (c, i, j) flatten order + matmul
    N, C, H, W = imgs.shape
    gh, gw = H // p, W // p
    x = imgs.reshape(N, C, gh, p, gw, p)
    x = x.transpose(0, 2, 4, 1, 3, 5).reshape(N * gh * gw, C * p * p)
    return linear2d(x, w, b).reshape(N, gh * gw, -1)


def patchify_target(imgs, p):
    # rearrange 'n c h p w q -> n (h w) (p q c)'
    N, C, H, W = imgs.shape
    gh, gw = H // p, W // p
    x = imgs.reshape(N, C, gh, p, gw, p)
    x = x.transpose(0, 2, 4, 3, 5, 1)  # n h w p q c
    return x.reshape(N, gh * gw, p * p * C)


def random_masking(x, mask_ratio, key):
    N, L, D = x.shape
    len_keep = int(L * (1 - mask_ratio))
    noise = jax.random.uniform(key, (N, L))
    ids_shuffle = jnp.argsort(noise, axis=1)
    ids_restore = jnp.argsort(ids_shuffle, axis=1)
    ids_keep = ids_shuffle[:, :len_keep]
    idx = jnp.broadcast_to(ids_keep[:, :, None], (N, len_keep, D))
    x_masked = jnp.take_along_axis(x, idx, axis=1)
    mask = jnp.ones((N, L), F32).at[:, :len_keep].set(0.0)
    mask = jnp.take_along_axis(mask, ids_restore, axis=1)
    return x_masked, mask, ids_restore


def bert_encoder_surrogate(p, latent_img_global, ids, attention_mask, type_ids):
    # TODO(synk): real BertEncoder (HuggingFace BERT conditioned on the image latent) is an
    # external module; surrogate = masked-mean token embeddings + image latent -> Linear(768,768).
    emb = p['tok_emb'][ids]                                    # (N, T, 768) gather (glue)
    m = attention_mask[..., None].astype(F32)
    pooled = jnp.sum(emb * m, axis=1) / jnp.maximum(jnp.sum(m, axis=1), 1.0)
    h = pooled + latent_img_global
    return linear2d(h, p['bert_w'], p['bert_b'])               # (N, 768) "logits"


def cross_entropy(logits, targets, weight=None):
    # matches torch.nn.CrossEntropyLoss (reduction='mean', optional class weights)
    logz = jax.nn.logsumexp(logits, axis=-1)
    picked = jnp.take_along_axis(logits, targets[:, None], axis=-1)[:, 0]
    nll = logz - picked
    if weight is None:
        return jnp.mean(nll)
    w = weight[targets]
    return jnp.sum(w * nll) / jnp.sum(w)


def maco_forward(p, cfg, batch, mask_ratio=0.5, key=None):
    big_imgs = batch['image'].astype(F32)
    ids, attention_mask, type_ids = batch['ids'], batch['attention_mask'], batch['type_ids']
    imgs = big_imgs                                            # SR == 0.0 branch

    # ---- image encoder: patch embed kernel + ONE fused pallas_call for all blocks ----
    x = patch_embed(imgs, p['patch_w'], p['patch_b'], cfg.patch_size)
    x = x + p['pos_embed'][:, 1:, :]
    x, mask, ids_restore = random_masking(x, mask_ratio, key)
    cls = p['cls_token'] + p['pos_embed'][:, :1, :]
    cls = jnp.broadcast_to(cls, (x.shape[0], 1, x.shape[2]))
    x = jnp.concatenate([cls, x], axis=1)
    latent_pre = vit_stack(x, p['enc_stack'], cfg.num_heads)   # (B, S_enc, D) bf16

    # ---- final encoder LN computed once, fused with decoder_embed and img_mlp ----
    dec_in, latent_img_global = encoder_head(
        latent_pre, p['norm_g'], p['norm_b'],
        p['dec_embed_w'], p['dec_embed_b'], p['img_mlp_w'], p['img_mlp_b'])

    # ---- decoder: token assembly (glue) + fused block stack + fused LN+pred ----
    B, S, Dd = dec_in.shape
    L = ids_restore.shape[1]
    mask_tokens = jnp.broadcast_to(p['mask_token'], (B, L + 1 - S, Dd))
    x_ = jnp.concatenate([dec_in[:, 1:, :], mask_tokens], axis=1)
    idx = jnp.broadcast_to(ids_restore[:, :, None], (B, L, Dd))
    x_ = jnp.take_along_axis(x_, idx, axis=1)
    xd = jnp.concatenate([dec_in[:, :1, :], x_], axis=1) + p['dec_pos_embed']
    xd = vit_stack(xd, p['dec_stack'], cfg.decoder_num_heads)
    pred = ln_linear(xd, p['dec_norm_g'], p['dec_norm_b'],
                     p['dec_pred_w'], p['dec_pred_b'])[:, 1:, :]

    # ---- MAE reconstruction loss (batch-tiled accumulating kernel) ----
    target = patchify_target(big_imgs, cfg.patch_size)         # SR==0 -> p = patch_size
    loss_img = masked_mse_loss(pred, target, mask, norm_pix=cfg.norm_pix_loss)

    # ---- contrastive head ----
    # x_pos: gather of ones(kept) / zeros(mask tokens) then mean over D == 1 - mask
    x_pos = 1.0 - mask
    logits_report = bert_encoder_surrogate(p, latent_img_global, ids, attention_mask, type_ids)
    # N=1 output linear -> plain jnp (pallas_call here is pure launch overhead)
    x_ = x_pos @ p['pw_img_w'] + p['pw_img_b']                 # (N, 1)

    # gather_gradient == identity in the single-process (non-distributed) setting
    logits1, logits2 = create_logits(latent_img_global, logits_report, p['Tpar'])
    N = logits1.shape[0]
    gt = jnp.arange(N)
    scale = jnp.log(1.0 + jnp.exp(x_))                         # (N, 1)
    loss_c = cross_entropy(logits1 * scale, gt)
    loss_c = loss_c + cross_entropy(logits2 * scale, gt)
    w = jax.lax.stop_gradient(scale)[:, 0]
    loss_c = loss_c + cross_entropy(logits1, gt, weight=w)
    loss_c = loss_c + cross_entropy(logits2, gt, weight=w)
    loss_c = loss_c / 4.0
    return (loss_img, loss_c), pred, mask


# ----------------------------------- main ------------------------------------

if __name__ == "__main__":
    cfg = Config()
    key = jax.random.PRNGKey(0)
    k_img, k_ids, k_mask = jax.random.split(key, 3)
    B = 2
    batch = {
        'image': jax.random.normal(k_img, (B, cfg.in_chans, cfg.img_size, cfg.img_size),
                                   F32),
        'ids': jax.random.randint(k_ids, (B, cfg.text_len), 0, cfg.vocab),
        'labels': None,
        'attention_mask': jnp.ones((B, cfg.text_len), jnp.int32),
        'type_ids': jnp.zeros((B, cfg.text_len), jnp.int32),
    }
    params = init_params(cfg, jax.random.PRNGKey(42))

    (loss_img, loss_c), pred, mask = maco_forward(params, cfg, batch,
                                                  mask_ratio=0.5, key=k_mask)
    jax.block_until_ready((loss_img, loss_c, pred, mask))

    L = (cfg.img_size // cfg.patch_size) ** 2
    assert pred.shape == (B, L, cfg.patch_size ** 2 * cfg.in_chans)
    assert mask.shape == (B, L)
    assert np.isfinite(float(loss_img)) and np.isfinite(float(loss_c))
    print("KERNEL_OK")
</pallas_src>

<mosaic_0001>
module attributes {stable_mosaic.version = 11 : i64} {
  func.func @_linear_tiled_kernel(%arg0: i32, %arg1: i32, %arg2: i32, %arg3: memref<32x192xbf16, #tpu.memory_space<vmem>>, %arg4: memref<192x128xbf16, #tpu.memory_space<vmem>>, %arg5: memref<1x128xf32, #tpu.memory_space<vmem>>, %arg6: memref<32x128xf32, #tpu.memory_space<vmem>>, %arg7: memref<32x128xf32, #tpu.memory_space<vmem>>) attributes {dimension_semantics = [#tpu.dimension_semantics<parallel>, #tpu.dimension_semantics<parallel>, #tpu.dimension_semantics<arbitrary>], iteration_bounds = array<i64: 1, 1, 1>, scalar_prefetch = 0 : i64, scratch_operands = 1 : i64, tpu.core_type = #tpu.core_type<tc>, window_params = [{transform_indices = @transform_0, window_bounds = array<i64: 32, 192>}, {transform_indices = @transform_1, window_bounds = array<i64: 192, 128>}, {transform_indices = @transform_2, window_bounds = array<i64: 1, 128>}, {transform_indices = @transform_3, window_bounds = array<i64: 32, 128>}]} {
    %c0_i32 = arith.constant 0 : i32
    %0 = arith.cmpi eq, %arg2, %c0_i32 : i32
    %1 = arith.extui %0 : i1 to i32
    %c0_i32_0 = arith.constant 0 : i32
    %2 = arith.cmpi ne, %1, %c0_i32_0 : i32
    scf.if %2 {
      %cst_10 = arith.constant 0.000000e+00 : f32
      %12 = vector.broadcast %cst_10 : f32 to vector<32x128xf32>
      %c0_11 = arith.constant 0 : index
      %c0_12 = arith.constant 0 : index
      %13 = vector.load %arg7[%c0_11, %c0_12] : memref<32x128xf32, #tpu.memory_space<vmem>>, vector<32x128xf32>
      tpu.vector_store %arg7[%c0_11, %c0_12], %12 {strides = array<i32>} : memref<32x128xf32, #tpu.memory_space<vmem>>, vector<32x128xf32>,
    } else {
    }
    %c0 = arith.constant 0 : index
    %c0_1 = arith.constant 0 : index
    %3 = vector.load %arg7[%c0, %c0_1] : memref<32x128xf32, #tpu.memory_space<vmem>>, vector<32x128xf32>
    %c0_2 = arith.constant 0 : index
    %c0_3 = arith.constant 0 : index
    %4 = vector.load %arg3[%c0_2, %c0_3] : memref<32x192xbf16, #tpu.memory_space<vmem>>, vector<32x192xbf16>
    %c0_4 = arith.constant 0 : index
    %c0_5 = arith.constant 0 : index
    %5 = vector.load %arg4[%c0_4, %c0_5] : memref<192x128xbf16, #tpu.memory_space<vmem>>, vector<192x128xbf16>
    %cst = arith.constant dense<0.000000e+00> : vector<32x128xf32>
    %6 = tpu.matmul %4, %5, %cst {dimension_numbers = #tpu.dot_dimension_numbers<[1], [0], [0], [1], [0, 0, 1, 1], [], []>} : vector<32x192xbf16>, vector<192x128xbf16>, vector<32x128xf32> -> vector<32x128xf32>
    %7 = arith.addf %3, %6 : vector<32x128xf32>
    %c0_6 = arith.constant 0 : index
    %c0_7 = arith.constant 0 : index
    %8 = vector.load %arg7[%c0_6, %c0_7] : memref<32x128xf32, #tpu.memory_space<vmem>>, vector<32x128xf32>
    tpu.vector_store %arg7[%c0_6, %c0_7], %7 {strides = array<i32>} : memref<32x128xf32, #tpu.memory_space<vmem>>, vector<32x128xf32>,
    %c0_i32_8 = arith.constant 0 : i32
    %9 = arith.cmpi eq, %arg2, %c0_i32_8 : i32
    %10 = arith.extui %9 : i1 to i32
    %c0_i32_9 = arith.constant 0 : i32
    %11 = arith.cmpi ne, %10, %c0_i32_9 : i32
    scf.if %11 {
      %c0_10 = arith.constant 0 : index
      %c0_11 = arith.constant 0 : index
      %12 = vector.load %arg7[%c0_10, %c0_11] : memref<32x128xf32, #tpu.memory_space<vmem>>, vector<32x128xf32>
      %c0_12 = arith.constant 0 : index
      %c0_13 = arith.constant 0 : index
      %13 = vector.load %arg5[%c0_12, %c0_13] : memref<1x128xf32, #tpu.memory_space<vmem>>, vector<1x128xf32>
      %14 = vector.broadcast %13 : vector<1x128xf32> to vector<32x128xf32>
      %15 = arith.addf %12, %14 : vector<32x128xf32>
      %c0_14 = arith.constant 0 : index
      %c0_15 = arith.constant 0 : index
      %16 = vector.load %arg6[%c0_14, %c0_15] : memref<32x128xf32, #tpu.memory_space<vmem>>, vector<32x128xf32>
      tpu.vector_store %arg6[%c0_14, %c0_15], %15 {strides = array<i32>} : memref<32x128xf32, #tpu.memory_space<vmem>>, vector<32x128xf32>,
    } else {
    }
    return
  }
  func.func @transform_0(%arg0: i32, %arg1: i32, %arg2: i32) -> (i32, i32) {
    %c0_i32 = arith.constant 0 : i32
    return %arg0, %arg2 : i32, i32
  }
  func.func @transform_1(%arg0: i32, %arg1: i32, %arg2: i32) -> (i32, i32) {
    %c0_i32 = arith.constant 0 : i32
    return %arg2, %arg1 : i32, i32
  }
  func.func @transform_2(%arg0: i32, %arg1: i32, %arg2: i32) -> (i32, i32) {
    %c0_i32 = arith.constant 0 : i32
    %c0_i32_0 = arith.constant 0 : i32
    return %c0_i32, %arg1 : i32, i32
  }
  func.func @transform_3(%arg0: i32, %arg1: i32, %arg2: i32) -> (i32, i32) {
    %c0_i32 = arith.constant 0 : i32
    return %arg0, %arg1 : i32, i32
  }
}

</mosaic_0001>

<bundles_post_ra>
// kernel: tpu_custom_call.1
= control target key start
LH: loop header
LB: loop body
LE: loop exit
PB: predicated region body
PF: predicated region fallthrough
CT: control target
= control target key end

     0   :  { %8 = vsyncpa [#allocation4], 0  ;;  %s493_s0 = inlined_call_operand.hbm [shape: bf16[32,192], index: 0, kind: input, shape index: {}]   ;;  %s494_s1 = inlined_call_operand.hbm [shape: bf16[192,128], index: 1, kind: input, shape index: {}]   ;;  %s495_s2 = inlined_call_operand.vmem [shape: f32[1,128], index: 2, kind: input, shape index: {}]   ;;  %s496_s3 = inlined_call_operand.hbm [shape: f32[32,128], index: 3, kind: output, shape index: {}]  }
   0x1   :  { %9 = vsyncpa [#allocation7], 0 }
   0x2   :  { %10 = vsyncpa [#allocation5], 0  ;;  %s15_s14 = sshll.u32 %s493_s0, 4  ;;  %s446_s15 = smov [#allocation3]   ;;  %s16_s14 = int_to_ptr.hbm [resolvable:$true] %s15_s14 }
   0x3   :  { %s17_s16 = sshll.u32 %s446_s15, 4  ;;  %s28_s19 = sshll.u32 %s494_s1, 4  ;;  %s18_s16 = int_to_ptr.vmem [resolvable:$true] %s17_s16  ;;  %s29_s19 = int_to_ptr.hbm [resolvable:$true] %s28_s19 }
   0x4   :  { %s447_s20 = smov 128   ;;  %s448_s21 = smov 8  }
   0x5   :  { %23 = dma.hbm_to_vmem [thread:$0]  %s16_s14, 512, %s18_s16, [#allocation4], %s447_s20, %s447_s20, %s448_s21  }
   0x6   :  { %s449_s22 = smov [#allocation6]   ;;  %s450_s24 = smov 64  }
   0x7   :  { %s30_s23 = sshll.u32 %s449_s22, 4  ;;  %s451_s0 = smov 4   ;;  %s31_s23 = int_to_ptr.vmem [resolvable:$true] %s30_s23 }
   0x8   :  { %36 = dma.hbm_to_vmem [thread:$0]  %s29_s19, 1536, %s31_s23, [#allocation7], %s450_s24, %s450_s24, %s451_s0  }
   0x9   :  { %440 = dma.done.wait [#allocation4], 512  }
   0xa   :  { %441 = vsyncadd [#allocation4], 4294966784 }
   0xb   :  { %442 = dma.done.wait [#allocation7], 1536  }
   0xc   :  { %443 = vsyncadd [#allocation7], 4294965760  ;;  %v347_v0 = vld [vmem:[#allocation6 + $0x38] sm:$0xff]  ;;  %v346_v2 = vld [vmem:[#allocation6 + $0x30] sm:$0xff]  ;;  %vm178_vm0 = vcmask 523264   ;;  %s452_s26 = smov [#allocation8]  }
   0xd   :  { %v351_v1 = vld [vmem:[#allocation6 + $0x58] sm:$0xff]  ;;  %185 = vmatpush.bf16.msra.mxu0 %v347_v0  ;;  %352 = vmatpush.bf16.msra.mxu2 %v347_v0  ;;  %v350_v3 = vld [vmem:[#allocation6 + $0x50] sm:$0xff]  ;;  %v345_v4 = vld [vmem:[#allocation6 + $0x28] sm:$0xff]  ;;  %s254_s27 = sshll.u32 %s452_s26, 4  ;;  %s255_s27 = int_to_ptr.vmem [resolvable:$true] %s254_s27 }
   0xe   :  { %208 = vmatpush.bf16.msra.mxu1 %v351_v1  ;;  %v349_v5 = vld [vmem:[#allocation6 + $0x48] sm:$0xff]  ;;  %v344_v6 = vld [vmem:[#allocation6 + $0x20] sm:$0xff]  ;;  %v343_v11 = vld [vmem:[#allocation6 + $0x18] sm:$0xff] }
   0xf   :  { %v348_v7 = vld [vmem:[#allocation6 + $0x40] sm:$0xff]  ;;  %v274_v9 = vld [vmem:[#allocation3 + $0x8] sm:$0xf0]  ;;  %v342_v12 = vld [vmem:[#allocation6 + $0x10] sm:$0xff] }
  0x10   :  { %v336_v8 = vld [vmem:[#allocation3 + $0x4] sm:$0xf]  ;;  %v341_v13 = vld [vmem:[#allocation6 + $0x8] sm:$0xff]  ;;  %v272_v15 = vld [vmem:[#allocation3] sm:$0xf] }
  0x11   :  { %186 = vmatpush.bf16.msra.mxu0 %v346_v2  ;;  %353 = vmatpush.bf16.msra.mxu2 %v346_v2  ;;  %v277_v10 = vor.u32 %v336_v8, %v274_v9  ;;  %v340_v14 = vld [vmem:[#allocation6] sm:$0xff]  ;;  %v337_v16 = vld [vmem:[#allocation3 + $0x4] sm:$0xf0]  ;;  %v280_v17 = vld [vmem:[#allocation3 + $0x10] sm:$0xf] }
  0x12   :  { %209 = vmatpush.bf16.msra.mxu1 %v350_v3  ;;  %v339_v18 = vld [vmem:[#allocation3 + $0x14] sm:$0xf0]  ;;  %v338_v19 = vld [vmem:[#allocation3 + $0x14] sm:$0xf]  ;;  %v282_v20 = vld [vmem:[#allocation3 + $0x18] sm:$0xf0]  ;;  %v273_v21 = vor.u32 %v337_v16, %v272_v15 }
  0x13   :  { %v281_v22 = vor.u32 %v339_v18, %v280_v17  ;;  %v285_v23 = vor.u32 %v338_v19, %v282_v20  ;;  %v367_v26 = vld [vmem:[%s495_s2] ss:$0 sm:$0xff]  ;;  %s256_s2 = sshll.u32 %s496_s3, 4  ;;  %s257_s2 = int_to_ptr.hbm [resolvable:$true] %s256_s2 }
  0x15   :  { %187 = vmatpush.bf16.msra.mxu0 %v345_v4  ;;  %354 = vmatpush.bf16.msra.mxu2 %v345_v4 }
  0x16   :  { %210 = vmatpush.bf16.msra.mxu1 %v349_v5 }
  0x19   :  { %188 = vmatpush.bf16.msra.mxu0 %v344_v6  ;;  %355 = vmatpush.bf16.msra.mxu2 %v344_v6 }
  0x1a   :  { %211 = vmatpush.bf16.msra.mxu1 %v348_v7 }
  0x1d   :  { %334 = vmatmul.msk.bf16.vlgmr.msra.gmra.mxu1 %vm178_vm0, %v277_v10  ;;  %189 = vmatpush.bf16.msra.mxu0 %v343_v11 }
  0x1e   :  { %356 = vmatpush.bf16.msra.mxu2 %v343_v11 }
  0x21   :  { %190 = vmatpush.bf16.msra.mxu0 %v342_v12 }
  0x22   :  { %357 = vmatpush.bf16.msra.mxu2 %v342_v12 }
  0x25   :  { %191 = vmatpush.bf16.msra.mxu0 %v341_v13 }
  0x26   :  { %358 = vmatpush.bf16.msra.mxu2 %v341_v13 }
  0x29   :  { %192 = vmatpush.bf16.msra.mxu0 %v340_v14 }
  0x2a   :  { %359 = vmatpush.bf16.msra.mxu2 %v340_v14 }
  0x2c   :  { %193 = vmatmul.bf16.vlgmr.msra.gmra.mxu0 %v273_v21 }
  0x2d   :  { %198 = vmatmul.bf16.vlgmr.msra.gmra.mxu2 %v281_v22  ;;  %335 = vmatmul.msk.bf16.gmra.mxu1 %vm178_vm0, %v285_v23 }
  0x9a   :  { %v213_v24 = vpop.f32.mrf.mxu1 }
  0xa2   :  { %v215_v25 = vpop.f32.mrf.mxu1 }
  0xa9   :  { %v194_v27 = vpop.f32.mrf.mxu0 }
  0xaa   :  { %v214_v28 = vadd.f32 %v213_v24, %v194_v27  ;;  %v218_v30 = vpop.f32.mrf.mxu1 }
  0xac   :  { %v242_v29 = vadd.f32 %v367_v26, %v214_v28 }
  0xae   :  { %246 = vst [vmem:[#allocation8] sm:$0xff] %v242_v29 }
  0xb0   :  { %v199_v31 = vpop.f32.mrf.mxu2 }
  0xb1   :  { %v219_v32 = vadd.f32 %v218_v30, %v199_v31  ;;  %v196_v33 = vpop.f32.mrf.mxu0 }
  0xb2   :  { %v216_v34 = vadd.f32 %v215_v25, %v196_v33  ;;  %v220_v37 = vpop.f32.mrf.mxu1 }
  0xb3   :  { %v244_v35 = vadd.f32 %v367_v26, %v219_v32 }
  0xb4   :  { %v243_v36 = vadd.f32 %v367_v26, %v216_v34 }
  0xb5   :  { %248 = vst [vmem:[#allocation8 + $0x10] sm:$0xff] %v244_v35 }
  0xb6   :  { %247 = vst [vmem:[#allocation8 + $0x8] sm:$0xff] %v243_v36 }
  0xb8   :  { %v201_v38 = vpop.f32.mrf.mxu2 }
  0xb9   :  { %v221_v39 = vadd.f32 %v220_v37, %v201_v38 }
  0xbb   :  { %v245_v40 = vadd.f32 %v367_v26, %v221_v39 }
  0xbd   :  { %249 = vst [vmem:[#allocation8 + $0x18] sm:$0xff] %v245_v40 }
  0xbe   :  { %262 = dma.vmem_to_hbm [thread:$0]  %s255_s27, 512, %s257_s2, [#allocation5], %s447_s20, %s447_s20, %s448_s21  }
  0xbf   :  { %444 = dma.done.wait [#allocation5], 512  }
  0xc0   :  { %445 = vsyncadd [#allocation5], 4294966784 }
  0xc1   :  { %267 = vsyncpa [#allocation4], 1 }
  0xc2   :  { %268 = vsyncpa [#allocation7], 1 }
  0xc3   :  { %269 = vsyncpa [#allocation5], 1 }

</bundles_post_ra>
